<compile_context>
chip_gen: v7x
topology: tpu7x:2x2x1
jax: 0.10.0
libtpu: 0.0.40
codegen_flags: <defaults>
</compile_context>

<pallas_src>
import functools

import jax
import jax.numpy as jnp
from jax.experimental import pallas as pl
from jax.experimental.pallas import tpu as pltpu

_ROW = 16  # node-row granularity: multiple of bf16 (16,128) and f32 (8,128) sublane tiles
_DOT_REF = functools.partial(jnp.dot, precision=jax.lax.Precision.HIGHEST)


def _round_up(x, m):
    return (x + m - 1) // m * m


def _cdiv(a, b):
    return (a + b - 1) // b


def _choose_tile(n, tile_n):
    """(tile_n, padded_N): _ROW granularity, minimal padding, >=2 grid steps when the
    graph is big enough so both v7x TensorCores get work."""
    n_pad = _round_up(max(n, 1), _ROW)
    tile_n = max(_ROW, min(_round_up(tile_n, _ROW), n_pad))
    num_tiles = _cdiv(n_pad, tile_n)
    if num_tiles < 2 and n_pad >= 2 * _ROW:
        num_tiles = 2
    tile_n = _round_up(_cdiv(n_pad, num_tiles), _ROW)
    num_tiles = _cdiv(n_pad, tile_n)
    return tile_n, tile_n * num_tiles


# ----------------------------------------------------------------------------- kernel
def _gnn_module_kernel(hv_ref, hp_ref, hn_ref,
                       wq_ref, wkvp_ref, wkvn_ref, wo_ref, hsel_ref,
                       bn0s_ref, bn0b_ref, w1_ref, b1_ref, w2_ref, b2_ref,
                       bn1s_ref, bn1b_ref, out_ref, *, inv_sqrt_d):
    dot = functools.partial(jnp.dot, preferred_element_type=jnp.float32)

    x = hv_ref[...]                                    # [TN, H]  f32 node features
    ep = hp_ref[...]                                   # [K, TN, H] bf16 edge (h_P) feats
    en = hn_ref[...]                                   # [K, TN, H] bf16 gathered nbr h_V
    K, TN, H = ep.shape
    ep2 = ep.reshape(K * TN, H)
    en2 = en.reshape(K * TN, H)

    # ---- QKV neighbour attention --------------------------------------------
    q = dot(x, wq_ref[...])                                       # [TN, H]
    # fused K||V projection, W_K/W_V split over the two concatenated input halves
    kv = dot(ep2, wkvp_ref[...]) + dot(en2, wkvn_ref[...])        # [K*TN, 2H] f32
    kf = kv[:, :H]
    vf = kv[:, H:]

    # per-head logit replicated across each head's d columns (block-diag matmul)
    prod = kf.reshape(K, TN, H) * q[None, :, :]                   # [K, TN, H]
    logits = dot(prod.reshape(K * TN, H),
                 hsel_ref[...]).reshape(K, TN, H) * inv_sqrt_d    # [K, TN, H]

    # softmax over the K neighbours (leading axis); normalisation deferred
    m = jnp.max(logits, axis=0)                                   # [TN, H]
    pexp = jnp.exp(logits - m[None, :, :])                        # [K, TN, H]
    s = jnp.sum(pexp, axis=0)                                     # [TN, H]
    ctx = jnp.sum(pexp * vf.reshape(K, TN, H), axis=0)            # un-normalised sum
    ctx = ctx * pl.reciprocal(s, approx=True)                     # one EUP reciprocal
    h_att = dot(ctx, wo_ref[...])                                 # [TN, H]

    # ---- residual + BatchNorm1d(eval, folded) + MLP + residual + BN ----------
    h1 = (x + h_att) * bn0s_ref[...] + bn0b_ref[...]
    hid = jnp.maximum(dot(h1, w1_ref[...]) + b1_ref[...], 0.0)
    dh = dot(hid, w2_ref[...]) + b2_ref[...]
    out_ref[...] = ((h1 + dh) * bn1s_ref[...] + bn1b_ref[...]).astype(out_ref.dtype)


# ----------------------------------------------------------------------------- wrappers
def gnn_module_forward(h_V, h_P_t, h_nbr_t, p, *, num_heads, tile_n=256):
    """One GNNModule.  h_V: [N, H] f32; h_P_t, h_nbr_t: [K, N, H] bf16."""
    N, H = h_V.shape
    K = h_P_t.shape[0]
    d = H // num_heads
    inv_sqrt_d = 1.0 / (d ** 0.5)

    tile_n, Np = _choose_tile(N, tile_n)
    pad = Np - N
    if pad:
        h_V = jnp.pad(h_V, ((0, pad), (0, 0)))
        h_P_t = jnp.pad(h_P_t, ((0, 0), (0, pad), (0, 0)))
        h_nbr_t = jnp.pad(h_nbr_t, ((0, 0), (0, pad), (0, 0)))

    consts = [p["wq"], p["wkv_p"], p["wkv_n"], p["wo"], p["hsel"],
              p["bn0_scale"], p["bn0_shift"], p["w1"], p["b1"],
              p["w2"], p["b2"], p["bn1_scale"], p["bn1_shift"]]

    def _const_spec(a):
        # TODO(synk): pipeline_mode=pl.Buffered(1) would single-buffer these constants
        # (tiny here; a few hundred KiB of headroom on bigger configs).
        return pl.BlockSpec(a.shape, lambda i, _nd=a.ndim: (0,) * _nd)

    grid = (Np // tile_n,)
    E = Np * K
    flops = 2 * (Np * H * H                  # W_Q
                 + 2 * E * H * 2 * H         # fused K||V projection (two halves)
                 + E * H * H                 # block-diagonal head reduce
                 + Np * H * H                # W_O
                 + 2 * Np * H * 4 * H)       # MLP
    const_bytes = sum(int(a.size) * a.dtype.itemsize for a in consts)
    bytes_accessed = 8 * Np * H + 4 * E * H + const_bytes
    cost = pl.CostEstimate(flops=int(flops), transcendentals=int(E * H + Np * H),
                           bytes_accessed=int(bytes_accessed))

    out = pl.pallas_call(
        functools.partial(_gnn_module_kernel, inv_sqrt_d=inv_sqrt_d),
        out_shape=jax.ShapeDtypeStruct((Np, H), jnp.float32),
        grid_spec=pltpu.PrefetchScalarGridSpec(
            num_scalar_prefetch=0,
            grid=grid,
            in_specs=[pl.BlockSpec((tile_n, H), lambda i: (i, 0)),
                      pl.BlockSpec((K, tile_n, H), lambda i: (0, i, 0)),
                      pl.BlockSpec((K, tile_n, H), lambda i: (0, i, 0))]
                     + [_const_spec(a) for a in consts],
            out_specs=pl.BlockSpec((tile_n, H), lambda i: (i, 0)),
        ),
        compiler_params=pltpu.CompilerParams(
            dimension_semantics=("parallel",),
            vmem_limit_bytes=32 * 1024 * 1024),
        cost_estimate=cost,
    )(h_V, h_P_t, h_nbr_t, *consts)
    return out[:N]


def structure_encoder_forward(h_V, h_P, P_idx, batch_id, layer_params, *,
                              num_heads=4, tile_n=256):
    """StructureEncoder.forward.  h_V: [N, H]; h_P: [E, H]; P_idx: [2, E]."""
    del batch_id  # unused by the QKV path / eval-mode BatchNorm (matches PyTorch eval)
    N, H = h_V.shape
    E = h_P.shape[0]
    assert E % N == 0, "kernel assumes a fixed-degree (KNN-style) graph"
    K = E // N
    # Layout contract: P_idx[0] == repeat(arange(N), K) (edges grouped by center node).
    try:
        ok = bool(jnp.array_equal(P_idx[0], jnp.repeat(jnp.arange(N), K)))
    except jax.errors.ConcretizationTypeError:
        ok = True  # traced under jit: the data-dependent check is skipped
    if not ok:
        raise ValueError("P_idx[0] must equal repeat(arange(N), K); edges must be "
                         "grouped by center node for the dense-K kernel layout")

    nbr_t = P_idx[1].reshape(N, K).T                        # [K, N] neighbour ids
    # Edge features laid out [K, N, H], streamed as bf16 (halves edge HBM traffic).
    h_P_t = h_P.reshape(N, K, H).transpose(1, 0, 2).astype(jnp.bfloat16)

    # TODO(synk): the h_V[P_idx[1]] gather between modules stays in XLA; pulling it
    # in-kernel (full h_V resident in VMEM + per-tile neighbour-id blocks) would remove
    # an E*H HBM round-trip per module.  Ragged / variable-degree graphs would need a
    # scalar-prefetched segment table + masking instead of this dense layout.
    for p1, p2 in layer_params:
        h_nbr = h_V[nbr_t].astype(jnp.bfloat16)             # [K, N, H]
        h_V = gnn_module_forward(h_V, h_P_t, h_nbr, p1, num_heads=num_heads,
                                 tile_n=tile_n)
        h_nbr = h_V[nbr_t].astype(jnp.bfloat16)
        h_V = h_V + gnn_module_forward(h_V, h_P_t, h_nbr, p2, num_heads=num_heads,
                                       tile_n=tile_n)
    return h_V


# ----------------------------------------------------------------------------- reference
def _qkv_attention_ref(h_V, h_E, center_id, p, num_heads):
    N, H = h_V.shape
    E = h_E.shape[0]
    d = H // num_heads
    q = _DOT_REF(h_V, p["wq"]).reshape(N, num_heads, d)
    k = _DOT_REF(h_E, p["wk"]).reshape(E, num_heads, d)
    v = _DOT_REF(h_E, p["wv"]).reshape(E, num_heads, d)
    logits = (q[center_id] * k).sum(-1) / (d ** 0.5)               # [E, nh]
    m = jax.ops.segment_max(logits, center_id, num_segments=N)
    w = jnp.exp(logits - m[center_id])
    s = jax.ops.segment_sum(w, center_id, num_segments=N)
    attend = w / s[center_id]                                      # scatter_softmax
    ctx = jax.ops.segment_sum((attend[..., None] * v).reshape(E, H),
                              center_id, num_segments=N)           # scatter_sum
    return _DOT_REF(ctx, p["wo"])


def _gnn_module_ref(h_V, h_E, center_id, p, num_heads):
    dh = _qkv_attention_ref(h_V, h_E, center_id, p, num_heads)
    h1 = (h_V + dh) * p["bn0_scale"] + p["bn0_shift"]
    hid = jnp.maximum(_DOT_REF(h1, p["w1"]) + p["b1"], 0.0)
    dh2 = _DOT_REF(hid, p["w2"]) + p["b2"]
    return (h1 + dh2) * p["bn1_scale"] + p["bn1_shift"]


def _structure_encoder_ref(h_V, h_P, P_idx, layer_params, num_heads):
    center_id, src = P_idx[0], P_idx[1]
    for p1, p2 in layer_params:
        h_E = jnp.concatenate([h_P, h_V[src]], axis=-1)
        h_V = _gnn_module_ref(h_V, h_E, center_id, p1, num_heads)
        h_E = jnp.concatenate([h_P, h_V[src]], axis=-1)
        h_V = h_V + _gnn_module_ref(h_V, h_E, center_id, p2, num_heads)
    return h_V


# ----------------------------------------------------------------------------- params
def init_gnn_params(key, H, num_heads):
    d = H // num_heads
    ks = jax.random.split(key, 16)

    def lin_w(k, fan_in, fan_out):
        b = 1.0 / (fan_in ** 0.5)
        return jax.random.uniform(k, (fan_in, fan_out), minval=-b, maxval=b,
                                  dtype=jnp.float32)

    def lin_b(k, fan_in, fan_out):
        b = 1.0 / (fan_in ** 0.5)
        return jax.random.uniform(k, (1, fan_out), minval=-b, maxval=b,
                                  dtype=jnp.float32)

    wk = lin_w(ks[1], 2 * H, H)
    wv = lin_w(ks[2], 2 * H, H)
    p = {
        "wq": lin_w(ks[0], H, H),
        "wk": wk, "wv": wv,
        "wo": lin_w(ks[3], H, H),
        "w1": lin_w(ks[4], H, 4 * H),
        "b1": lin_b(ks[5], H, 4 * H),
        "w2": lin_w(ks[6], 4 * H, H),
        "b2": lin_b(ks[7], 4 * H, H),
    }
    # Fused K||V projection weights, split over the two concatenated input halves
    # (h_P || h_V[nbr]); stored bf16 -> single-pass MXU with f32 accumulation.
    p["wkv_p"] = jnp.concatenate([wk[:H], wv[:H]], axis=1).astype(jnp.bfloat16)
    p["wkv_n"] = jnp.concatenate([wk[H:], wv[H:]], axis=1).astype(jnp.bfloat16)
    # Block-diagonal head-selection matrix: col j sums head(j)'s d columns, so the
    # per-head logit is replicated across each head's feature columns.
    head_of = jnp.arange(H) // d
    p["hsel"] = (head_of[:, None] == head_of[None, :]).astype(jnp.float32)
    # BatchNorm1d in eval mode, folded to per-channel scale/shift.
    for i, base in enumerate((8, 12)):
        gamma = 1.0 + 0.1 * jax.random.normal(ks[base], (1, H), dtype=jnp.float32)
        beta = 0.1 * jax.random.normal(ks[base + 1], (1, H), dtype=jnp.float32)
        mean = 0.05 * jax.random.normal(ks[base + 2], (1, H), dtype=jnp.float32)
        var = jax.random.uniform(ks[base + 3], (1, H), minval=0.8, maxval=1.2,
                                 dtype=jnp.float32)
        scale = gamma / jnp.sqrt(var + 1e-5)
        p[f"bn{i}_scale"] = scale
        p[f"bn{i}_shift"] = beta - mean * scale
    return p


# ----------------------------------------------------------------------------- main
if __name__ == "__main__":
    HIDDEN = 32
    HEADS = 4
    LAYERS = 3
    BATCH, SEQ = 2, 8
    N = BATCH * SEQ          # 16 nodes
    K = 8                    # neighbours per node (KNN-style graph)

    key = jax.random.PRNGKey(0)
    k_v, k_p, k_params = jax.random.split(key, 3)
    h_V = jax.random.normal(k_v, (N, HIDDEN), dtype=jnp.float32)
    h_P = jax.random.normal(k_p, (N * K, HIDDEN), dtype=jnp.float32)

    # KNN-style graph within each batch element, edges grouped by center node.
    local = jnp.arange(N) % SEQ
    base = (jnp.arange(N) // SEQ) * SEQ
    nbr = (local[:, None] + 1 + jnp.arange(K)[None, :]) % SEQ + base[:, None]   # [N, K]
    center = jnp.repeat(jnp.arange(N), K)
    P_idx = jnp.stack([center, nbr.reshape(-1)], axis=0)            # [2, E]
    batch_id = jnp.arange(N) // SEQ

    pk = jax.random.split(k_params, LAYERS * 2)
    layer_params = [(init_gnn_params(pk[2 * l], HIDDEN, HEADS),
                     init_gnn_params(pk[2 * l + 1], HIDDEN, HEADS))
                    for l in range(LAYERS)]

    encoder = jax.jit(functools.partial(structure_encoder_forward,
                                        num_heads=HEADS, tile_n=256))
    out = jax.block_until_ready(encoder(h_V, h_P, P_idx, batch_id, layer_params))

    ref = _structure_encoder_ref(h_V, h_P, P_idx, layer_params, HEADS)
    assert out.shape == (N, HIDDEN)
    max_err = float(jnp.max(jnp.abs(out - ref)))
    scale = max(1.0, float(jnp.max(jnp.abs(ref))))
    # Kernel runs DEFAULT-precision / bf16 MXU passes (f32 accumulation) vs the
    # HIGHEST-precision f32 reference -> 2% of the reference's max magnitude.
    assert max_err <= 2e-2 * scale, f"max abs err {max_err} vs ref scale {scale}"

    print("KERNEL_OK")
</pallas_src>

<mosaic_0001>
module attributes {stable_mosaic.version = 11 : i64} {
  func.func @_gnn_module_kernel(%arg0: i32, %arg1: memref<16x32xf32, #tpu.memory_space<vmem>>, %arg2: memref<8x16x32xbf16, #tpu.memory_space<vmem>>, %arg3: memref<8x16x32xbf16, #tpu.memory_space<vmem>>, %arg4: memref<32x32xf32, #tpu.memory_space<vmem>>, %arg5: memref<32x64xbf16, #tpu.memory_space<vmem>>, %arg6: memref<32x64xbf16, #tpu.memory_space<vmem>>, %arg7: memref<32x32xf32, #tpu.memory_space<vmem>>, %arg8: memref<32x32xf32, #tpu.memory_space<vmem>>, %arg9: memref<1x32xf32, #tpu.memory_space<vmem>>, %arg10: memref<1x32xf32, #tpu.memory_space<vmem>>, %arg11: memref<32x128xf32, #tpu.memory_space<vmem>>, %arg12: memref<1x128xf32, #tpu.memory_space<vmem>>, %arg13: memref<128x32xf32, #tpu.memory_space<vmem>>, %arg14: memref<1x32xf32, #tpu.memory_space<vmem>>, %arg15: memref<1x32xf32, #tpu.memory_space<vmem>>, %arg16: memref<1x32xf32, #tpu.memory_space<vmem>>, %arg17: memref<16x32xf32, #tpu.memory_space<vmem>>) attributes {dimension_semantics = [#tpu.dimension_semantics<parallel>], iteration_bounds = array<i64: 1>, scalar_prefetch = 0 : i64, scratch_operands = 0 : i64, tpu.core_type = #tpu.core_type<tc>, window_params = [{transform_indices = @transform_0, window_bounds = array<i64: 16, 32>}, {transform_indices = @transform_1, window_bounds = array<i64: 8, 16, 32>}, {transform_indices = @transform_2, window_bounds = array<i64: 8, 16, 32>}, {pipeline_mode = #tpu.pipeline_mode<synchronous>, transform_indices = @transform_3, window_bounds = array<i64: 32, 32>}, {pipeline_mode = #tpu.pipeline_mode<synchronous>, transform_indices = @transform_4, window_bounds = array<i64: 32, 64>}, {pipeline_mode = #tpu.pipeline_mode<synchronous>, transform_indices = @transform_5, window_bounds = array<i64: 32, 64>}, {pipeline_mode = #tpu.pipeline_mode<synchronous>, transform_indices = @transform_6, window_bounds = array<i64: 32, 32>}, {pipeline_mode = #tpu.pipeline_mode<synchronous>, transform_indices = @transform_7, window_bounds = array<i64: 32, 32>}, {pipeline_mode = #tpu.pipeline_mode<synchronous>, transform_indices = @transform_8, window_bounds = array<i64: 1, 32>}, {pipeline_mode = #tpu.pipeline_mode<synchronous>, transform_indices = @transform_9, window_bounds = array<i64: 1, 32>}, {pipeline_mode = #tpu.pipeline_mode<synchronous>, transform_indices = @transform_10, window_bounds = array<i64: 32, 128>}, {pipeline_mode = #tpu.pipeline_mode<synchronous>, transform_indices = @transform_11, window_bounds = array<i64: 1, 128>}, {pipeline_mode = #tpu.pipeline_mode<synchronous>, transform_indices = @transform_12, window_bounds = array<i64: 128, 32>}, {pipeline_mode = #tpu.pipeline_mode<synchronous>, transform_indices = @transform_13, window_bounds = array<i64: 1, 32>}, {pipeline_mode = #tpu.pipeline_mode<synchronous>, transform_indices = @transform_14, window_bounds = array<i64: 1, 32>}, {pipeline_mode = #tpu.pipeline_mode<synchronous>, transform_indices = @transform_15, window_bounds = array<i64: 1, 32>}, {transform_indices = @transform_16, window_bounds = array<i64: 16, 32>}]} {
    %c0 = arith.constant 0 : index
    %c0_0 = arith.constant 0 : index
    %0 = vector.load %arg1[%c0, %c0_0] : memref<16x32xf32, #tpu.memory_space<vmem>>, vector<16x32xf32>
    %c0_1 = arith.constant 0 : index
    %c0_2 = arith.constant 0 : index
    %c0_3 = arith.constant 0 : index
    %1 = vector.load %arg2[%c0_1, %c0_2, %c0_3] : memref<8x16x32xbf16, #tpu.memory_space<vmem>>, vector<8x16x32xbf16>
    %c0_4 = arith.constant 0 : index
    %c0_5 = arith.constant 0 : index
    %c0_6 = arith.constant 0 : index
    %2 = vector.load %arg3[%c0_4, %c0_5, %c0_6] : memref<8x16x32xbf16, #tpu.memory_space<vmem>>, vector<8x16x32xbf16>
    %3 = vector.shape_cast %1 : vector<8x16x32xbf16> to vector<128x32xbf16>
    %4 = vector.shape_cast %2 : vector<8x16x32xbf16> to vector<128x32xbf16>
    %c0_7 = arith.constant 0 : index
    %c0_8 = arith.constant 0 : index
    %5 = vector.load %arg4[%c0_7, %c0_8] : memref<32x32xf32, #tpu.memory_space<vmem>>, vector<32x32xf32>
    %cst = arith.constant dense<0.000000e+00> : vector<16x32xf32>
    %6 = tpu.matmul %0, %5, %cst {dimension_numbers = #tpu.dot_dimension_numbers<[1], [0], [0], [1], [0, 0, 1, 1], [], []>} : vector<16x32xf32>, vector<32x32xf32>, vector<16x32xf32> -> vector<16x32xf32>
    %c0_9 = arith.constant 0 : index
    %c0_10 = arith.constant 0 : index
    %7 = vector.load %arg5[%c0_9, %c0_10] : memref<32x64xbf16, #tpu.memory_space<vmem>>, vector<32x64xbf16>
    %cst_11 = arith.constant dense<0.000000e+00> : vector<128x64xf32>
    %8 = tpu.matmul %3, %7, %cst_11 {dimension_numbers = #tpu.dot_dimension_numbers<[1], [0], [0], [1], [0, 0, 1, 1], [], []>} : vector<128x32xbf16>, vector<32x64xbf16>, vector<128x64xf32> -> vector<128x64xf32>
    %c0_12 = arith.constant 0 : index
    %c0_13 = arith.constant 0 : index
    %9 = vector.load %arg6[%c0_12, %c0_13] : memref<32x64xbf16, #tpu.memory_space<vmem>>, vector<32x64xbf16>
    %cst_14 = arith.constant dense<0.000000e+00> : vector<128x64xf32>
    %10 = tpu.matmul %4, %9, %cst_14 {dimension_numbers = #tpu.dot_dimension_numbers<[1], [0], [0], [1], [0, 0, 1, 1], [], []>} : vector<128x32xbf16>, vector<32x64xbf16>, vector<128x64xf32> -> vector<128x64xf32>
    %11 = arith.addf %8, %10 : vector<128x64xf32>
    %12 = vector.extract_strided_slice %11 {offsets = [0, 0], sizes = [128, 32], strides = [1, 1]} : vector<128x64xf32> to vector<128x32xf32>
    %13 = vector.extract_strided_slice %11 {offsets = [0, 32], sizes = [128, 32], strides = [1, 1]} : vector<128x64xf32> to vector<128x32xf32>
    %14 = vector.shape_cast %12 : vector<128x32xf32> to vector<8x16x32xf32>
    %15 = vector.shape_cast %6 : vector<16x32xf32> to vector<1x16x32xf32>
    %16 = vector.broadcast %15 : vector<1x16x32xf32> to vector<8x16x32xf32>
    %17 = arith.mulf %14, %16 : vector<8x16x32xf32>
    %18 = vector.shape_cast %17 : vector<8x16x32xf32> to vector<128x32xf32>
    %c0_15 = arith.constant 0 : index
    %c0_16 = arith.constant 0 : index
    %19 = vector.load %arg8[%c0_15, %c0_16] : memref<32x32xf32, #tpu.memory_space<vmem>>, vector<32x32xf32>
    %cst_17 = arith.constant dense<0.000000e+00> : vector<128x32xf32>
    %20 = tpu.matmul %18, %19, %cst_17 {dimension_numbers = #tpu.dot_dimension_numbers<[1], [0], [0], [1], [0, 0, 1, 1], [], []>} : vector<128x32xf32>, vector<32x32xf32>, vector<128x32xf32> -> vector<128x32xf32>
    %21 = vector.shape_cast %20 : vector<128x32xf32> to vector<8x16x32xf32>
    %cst_18 = arith.constant 0.353553385 : f32
    %22 = vector.broadcast %cst_18 : f32 to vector<8x16x32xf32>
    %23 = arith.mulf %21, %22 : vector<8x16x32xf32>
    %cst_19 = arith.constant dense<0xFF800000> : vector<16x32xf32>
    %24 = vector.multi_reduction <maximumf>, %23, %cst_19 [0] : vector<8x16x32xf32> to vector<16x32xf32>
    %25 = vector.shape_cast %24 : vector<16x32xf32> to vector<1x16x32xf32>
    %26 = vector.broadcast %25 : vector<1x16x32xf32> to vector<8x16x32xf32>
    %27 = arith.subf %23, %26 : vector<8x16x32xf32>
    %28 = math.exp %27 : vector<8x16x32xf32>
    %cst_20 = arith.constant dense<0.000000e+00> : vector<16x32xf32>
    %29 = vector.multi_reduction <add>, %28, %cst_20 [0] : vector<8x16x32xf32> to vector<16x32xf32>
    %30 = vector.shape_cast %13 : vector<128x32xf32> to vector<8x16x32xf32>
    %31 = arith.mulf %28, %30 : vector<8x16x32xf32>
    %cst_21 = arith.constant dense<0.000000e+00> : vector<16x32xf32>
    %32 = vector.multi_reduction <add>, %31, %cst_21 [0] : vector<8x16x32xf32> to vector<16x32xf32>
    %33 = tpu.reciprocal %29 {approx = true} : vector<16x32xf32> -> vector<16x32xf32>
    %34 = arith.mulf %32, %33 : vector<16x32xf32>
    %c0_22 = arith.constant 0 : index
    %c0_23 = arith.constant 0 : index
    %35 = vector.load %arg7[%c0_22, %c0_23] : memref<32x32xf32, #tpu.memory_space<vmem>>, vector<32x32xf32>
    %cst_24 = arith.constant dense<0.000000e+00> : vector<16x32xf32>
    %36 = tpu.matmul %34, %35, %cst_24 {dimension_numbers = #tpu.dot_dimension_numbers<[1], [0], [0], [1], [0, 0, 1, 1], [], []>} : vector<16x32xf32>, vector<32x32xf32>, vector<16x32xf32> -> vector<16x32xf32>
    %37 = arith.addf %0, %36 : vector<16x32xf32>
    %c0_25 = arith.constant 0 : index
    %c0_26 = arith.constant 0 : index
    %38 = vector.load %arg9[%c0_25, %c0_26] : memref<1x32xf32, #tpu.memory_space<vmem>>, vector<1x32xf32>
    %39 = vector.broadcast %38 : vector<1x32xf32> to vector<16x32xf32>
    %40 = arith.mulf %37, %39 : vector<16x32xf32>
    %c0_27 = arith.constant 0 : index
    %c0_28 = arith.constant 0 : index
    %41 = vector.load %arg10[%c0_27, %c0_28] : memref<1x32xf32, #tpu.memory_space<vmem>>, vector<1x32xf32>
    %42 = vector.broadcast %41 : vector<1x32xf32> to vector<16x32xf32>
    %43 = arith.addf %40, %42 : vector<16x32xf32>
    %c0_29 = arith.constant 0 : index
    %c0_30 = arith.constant 0 : index
    %44 = vector.load %arg11[%c0_29, %c0_30] : memref<32x128xf32, #tpu.memory_space<vmem>>, vector<32x128xf32>
    %cst_31 = arith.constant dense<0.000000e+00> : vector<16x128xf32>
    %45 = tpu.matmul %43, %44, %cst_31 {dimension_numbers = #tpu.dot_dimension_numbers<[1], [0], [0], [1], [0, 0, 1, 1], [], []>} : vector<16x32xf32>, vector<32x128xf32>, vector<16x128xf32> -> vector<16x128xf32>
    %c0_32 = arith.constant 0 : index
    %c0_33 = arith.constant 0 : index
    %46 = vector.load %arg12[%c0_32, %c0_33] : memref<1x128xf32, #tpu.memory_space<vmem>>, vector<1x128xf32>
    %47 = vector.broadcast %46 : vector<1x128xf32> to vector<16x128xf32>
    %48 = arith.addf %45, %47 : vector<16x128xf32>
    %cst_34 = arith.constant 0.000000e+00 : f32
    %49 = vector.broadcast %cst_34 : f32 to vector<16x128xf32>
    %50 = arith.maximumf %48, %49 : vector<16x128xf32>
    %c0_35 = arith.constant 0 : index
    %c0_36 = arith.constant 0 : index
    %51 = vector.load %arg13[%c0_35, %c0_36] : memref<128x32xf32, #tpu.memory_space<vmem>>, vector<128x32xf32>
    %cst_37 = arith.constant dense<0.000000e+00> : vector<16x32xf32>
    %52 = tpu.matmul %50, %51, %cst_37 {dimension_numbers = #tpu.dot_dimension_numbers<[1], [0], [0], [1], [0, 0, 1, 1], [], []>} : vector<16x128xf32>, vector<128x32xf32>, vector<16x32xf32> -> vector<16x32xf32>
    %c0_38 = arith.constant 0 : index
    %c0_39 = arith.constant 0 : index
    %53 = vector.load %arg14[%c0_38, %c0_39] : memref<1x32xf32, #tpu.memory_space<vmem>>, vector<1x32xf32>
    %54 = vector.broadcast %53 : vector<1x32xf32> to vector<16x32xf32>
    %55 = arith.addf %52, %54 : vector<16x32xf32>
    %56 = arith.addf %43, %55 : vector<16x32xf32>
    %c0_40 = arith.constant 0 : index
    %c0_41 = arith.constant 0 : index
    %57 = vector.load %arg15[%c0_40, %c0_41] : memref<1x32xf32, #tpu.memory_space<vmem>>, vector<1x32xf32>
    %58 = vector.broadcast %57 : vector<1x32xf32> to vector<16x32xf32>
    %59 = arith.mulf %56, %58 : vector<16x32xf32>
    %c0_42 = arith.constant 0 : index
    %c0_43 = arith.constant 0 : index
    %60 = vector.load %arg16[%c0_42, %c0_43] : memref<1x32xf32, #tpu.memory_space<vmem>>, vector<1x32xf32>
    %61 = vector.broadcast %60 : vector<1x32xf32> to vector<16x32xf32>
    %62 = arith.addf %59, %61 : vector<16x32xf32>
    %c0_44 = arith.constant 0 : index
    %c0_45 = arith.constant 0 : index
    %63 = vector.load %arg17[%c0_44, %c0_45] : memref<16x32xf32, #tpu.memory_space<vmem>>, vector<16x32xf32>
    tpu.vector_store %arg17[%c0_44, %c0_45], %62 {strides = array<i32>} : memref<16x32xf32, #tpu.memory_space<vmem>>, vector<16x32xf32>,
    return
  }
  func.func @transform_0(%arg0: i32) -> (i32, i32) {
    %c0_i32 = arith.constant 0 : i32
    %c0_i32_0 = arith.constant 0 : i32
    return %arg0, %c0_i32 : i32, i32
  }
  func.func @transform_1(%arg0: i32) -> (i32, i32, i32) {
    %c0_i32 = arith.constant 0 : i32
    %c0_i32_0 = arith.constant 0 : i32
    %c0_i32_1 = arith.constant 0 : i32
    return %c0_i32, %arg0, %c0_i32_0 : i32, i32, i32
  }
  func.func @transform_2(%arg0: i32) -> (i32, i32, i32) {
    %c0_i32 = arith.constant 0 : i32
    %c0_i32_0 = arith.constant 0 : i32
    %c0_i32_1 = arith.constant 0 : i32
    return %c0_i32, %arg0, %c0_i32_0 : i32, i32, i32
  }
  func.func @transform_3(%arg0: i32) -> (i32, i32) {
    %c0_i32 = arith.constant 0 : i32
    %c0_i32_0 = arith.constant 0 : i32
    %c0_i32_1 = arith.constant 0 : i32
    return %c0_i32, %c0_i32_0 : i32, i32
  }
  func.func @transform_4(%arg0: i32) -> (i32, i32) {
    %c0_i32 = arith.constant 0 : i32
    %c0_i32_0 = arith.constant 0 : i32
    %c0_i32_1 = arith.constant 0 : i32
    return %c0_i32, %c0_i32_0 : i32, i32
  }
  func.func @transform_5(%arg0: i32) -> (i32, i32) {
    %c0_i32 = arith.constant 0 : i32
    %c0_i32_0 = arith.constant 0 : i32
    %c0_i32_1 = arith.constant 0 : i32
    return %c0_i32, %c0_i32_0 : i32, i32
  }
  func.func @transform_6(%arg0: i32) -> (i32, i32) {
    %c0_i32 = arith.constant 0 : i32
    %c0_i32_0 = arith.constant 0 : i32
    %c0_i32_1 = arith.constant 0 : i32
    return %c0_i32, %c0_i32_0 : i32, i32
  }
  func.func @transform_7(%arg0: i32) -> (i32, i32) {
    %c0_i32 = arith.constant 0 : i32
    %c0_i32_0 = arith.constant 0 : i32
    %c0_i32_1 = arith.constant 0 : i32
    return %c0_i32, %c0_i32_0 : i32, i32
  }
  func.func @transform_8(%arg0: i32) -> (i32, i32) {
    %c0_i32 = arith.constant 0 : i32
    %c0_i32_0 = arith.constant 0 : i32
    %c0_i32_1 = arith.constant 0 : i32
    return %c0_i32, %c0_i32_0 : i32, i32
  }
  func.func @transform_9(%arg0: i32) -> (i32, i32) {
    %c0_i32 = arith.constant 0 : i32
    %c0_i32_0 = arith.constant 0 : i32
    %c0_i32_1 = arith.constant 0 : i32
    return %c0_i32, %c0_i32_0 : i32, i32
  }
  func.func @transform_10(%arg0: i32) -> (i32, i32) {
    %c0_i32 = arith.constant 0 : i32
    %c0_i32_0 = arith.constant 0 : i32
    %c0_i32_1 = arith.constant 0 : i32
    return %c0_i32, %c0_i32_0 : i32, i32
  }
  func.func @transform_11(%arg0: i32) -> (i32, i32) {
    %c0_i32 = arith.constant 0 : i32
    %c0_i32_0 = arith.constant 0 : i32
    %c0_i32_1 = arith.constant 0 : i32
    return %c0_i32, %c0_i32_0 : i32, i32
  }
  func.func @transform_12(%arg0: i32) -> (i32, i32) {
    %c0_i32 = arith.constant 0 : i32
    %c0_i32_0 = arith.constant 0 : i32
    %c0_i32_1 = arith.constant 0 : i32
    return %c0_i32, %c0_i32_0 : i32, i32
  }
  func.func @transform_13(%arg0: i32) -> (i32, i32) {
    %c0_i32 = arith.constant 0 : i32
    %c0_i32_0 = arith.constant 0 : i32
    %c0_i32_1 = arith.constant 0 : i32
    return %c0_i32, %c0_i32_0 : i32, i32
  }
  func.func @transform_14(%arg0: i32) -> (i32, i32) {
    %c0_i32 = arith.constant 0 : i32
    %c0_i32_0 = arith.constant 0 : i32
    %c0_i32_1 = arith.constant 0 : i32
    return %c0_i32, %c0_i32_0 : i32, i32
  }
  func.func @transform_15(%arg0: i32) -> (i32, i32) {
    %c0_i32 = arith.constant 0 : i32
    %c0_i32_0 = arith.constant 0 : i32
    %c0_i32_1 = arith.constant 0 : i32
    return %c0_i32, %c0_i32_0 : i32, i32
  }
  func.func @transform_16(%arg0: i32) -> (i32, i32) {
    %c0_i32 = arith.constant 0 : i32
    %c0_i32_0 = arith.constant 0 : i32
    return %arg0, %c0_i32 : i32, i32
  }
}

</mosaic_0001>

<bundles_post_ra>
// kernel: squeeze.1
= control target key start
LH: loop header
LB: loop body
LE: loop exit
PB: predicated region body
PF: predicated region fallthrough
CT: control target
= control target key end

     0   :  { %s130_s8 = smov 104   ;;  %s131_s9 = smov 112   ;;  %vm7_vm0 = vcmask 64512   ;;  %s221_s0 = inlined_call_operand.vmem [shape: s32[128], index: 0, kind: input, shape index: {}]   ;;  %s222_s1 = inlined_call_operand.vmem [shape: s32[16,8], index: 1, kind: output, shape index: {}]  }
   0x1   :  { %v4_v0 = vld [vmem:[%s221_s0] sm:$0x1]  ;;  %s129_s0 = smov 120   ;;  %s132_s10 = smov 96  }
   0x2   :  { %5 = vst [vmem:[#allocation0] sm:$0x1] %v4_v0  ;;  %s133_s11 = smov 88   ;;  %s134_s12 = smov 80  }
   0x3   :  { %s135_s13 = smov 72   ;;  %s136_s14 = smov 64  }
   0x4   :  { %s137_s17 = smov 56   ;;  %s138_s18 = smov 48  }
   0x5   :  { %s139_s19 = smov 40   ;;  %s140_s20 = smov 32  }
   0x6   :  { %s141_s21 = smov 24   ;;  %s142_s22 = smov 16  }
   0x7   :  { %s143_s23 = smov 8  }
   0x9   :  { %v9_v1 = vld [vmem:[#allocation0] sm:$0x1]  }
   0xa   :  { %v21_v2 = vld [vmem:[#allocation0] sm:$0x1]   ;;  %10 = vrot.lane.b32.xlu0 %v9_v1, %s129_s0 }
   0xb   :  { %22 = vrot.lane.b32.xlu1 %v21_v2, %s130_s8  ;;  %v15_v3 = vld [vmem:[#allocation0] sm:$0x1]  }
   0xc   :  { %v27_v4 = vld [vmem:[#allocation0] sm:$0x1]  }
   0xd   :  { %v33_v5 = vld [vmem:[#allocation0] sm:$0x1]  }
   0xe   :  { %16 = vrot.lane.b32.xlu0 %v15_v3, %s131_s9  ;;  %v39_v6 = vld [vmem:[#allocation0] sm:$0x1]  }
   0xf   :  { %28 = vrot.lane.b32.xlu1 %v27_v4, %s132_s10  ;;  %v45_v7 = vld [vmem:[#allocation0] sm:$0x1]  }
  0x10   :  { %v51_v8 = vld [vmem:[#allocation0] sm:$0x1]  }
  0x11   :  { %v57_v9 = vld [vmem:[#allocation0] sm:$0x1]  }
  0x12   :  { %34 = vrot.lane.b32.xlu0 %v33_v5, %s133_s11  ;;  %v63_v10 = vld [vmem:[#allocation0] sm:$0x1]  }
  0x13   :  { %40 = vrot.lane.b32.xlu1 %v39_v6, %s134_s12  ;;  %v6_v11 = vld [vmem:[#allocation0] sm:$0x1]  }
  0x14   :  { %8 = vst.msk [vmem:[%s222_s1] sm:$0x1] %vm7_vm0, %v6_v11   ;;  %v69_v12 = vld [vmem:[#allocation0] sm:$0x1]  }
  0x15   :  { %v75_v13 = vld [vmem:[#allocation0] sm:$0x1]  }
  0x16   :  { %46 = vrot.lane.b32.xlu0 %v45_v7, %s135_s13  ;;  %v81_v14 = vld [vmem:[#allocation0] sm:$0x1]  }
  0x17   :  { %52 = vrot.lane.b32.xlu1 %v51_v8, %s136_s14  ;;  %v87_v15 = vld [vmem:[#allocation0] sm:$0x1]  }
  0x18   :  { %v93_v16 = vld [vmem:[#allocation0] sm:$0x1]  }
  0x1a   :  { %58 = vrot.lane.b32.xlu0 %v57_v9, %s137_s17 }
  0x1b   :  { %64 = vrot.lane.b32.xlu1 %v63_v10, %s138_s18 }
  0x1e   :  { %70 = vrot.lane.b32.xlu0 %v69_v12, %s139_s19 }
  0x1f   :  { %76 = vrot.lane.b32.xlu1 %v75_v13, %s140_s20 }
  0x22   :  { %82 = vrot.lane.b32.xlu0 %v81_v14, %s141_s21 }
  0x23   :  { %88 = vrot.lane.b32.xlu1 %v87_v15, %s142_s22 }
  0x26   :  { %94 = vrot.lane.b32.xlu0 %v93_v16, %s143_s23 }
  0x7c   :  { %v11_v17 = vpop.permute.xlu0 %10  }
  0x7d   :  { %v23_v18 = vpop.permute.xlu1 %22   ;;  %99 = vst.msk [vmem:[%s222_s1 + $0x1] sm:$0x1] %vm7_vm0, %v11_v17  }
  0x7e   :  { %101 = vst.msk [vmem:[%s222_s1 + $0x3] sm:$0x1] %vm7_vm0, %v23_v18  }
  0x80   :  { %v17_v19 = vpop.permute.xlu0 %16  }
  0x81   :  { %v29_v20 = vpop.permute.xlu1 %28   ;;  %100 = vst.msk [vmem:[%s222_s1 + $0x2] sm:$0x1] %vm7_vm0, %v17_v19  }
  0x82   :  { %102 = vst.msk [vmem:[%s222_s1 + $0x4] sm:$0x1] %vm7_vm0, %v29_v20  }
  0x84   :  { %v35_v21 = vpop.permute.xlu0 %34  }
  0x85   :  { %v41_v22 = vpop.permute.xlu1 %40   ;;  %103 = vst.msk [vmem:[%s222_s1 + $0x5] sm:$0x1] %vm7_vm0, %v35_v21  }
  0x86   :  { %104 = vst.msk [vmem:[%s222_s1 + $0x6] sm:$0x1] %vm7_vm0, %v41_v22  }
  0x88   :  { %v47_v23 = vpop.permute.xlu0 %46  }
  0x89   :  { %v53_v24 = vpop.permute.xlu1 %52   ;;  %105 = vst.msk [vmem:[%s222_s1 + $0x7] sm:$0x1] %vm7_vm0, %v47_v23  }
  0x8a   :  { %106 = vst.msk [vmem:[%s222_s1 + $0x8] sm:$0x1] %vm7_vm0, %v53_v24  }
  0x8c   :  { %v59_v25 = vpop.permute.xlu0 %58  }
  0x8d   :  { %v65_v26 = vpop.permute.xlu1 %64   ;;  %107 = vst.msk [vmem:[%s222_s1 + $0x9] sm:$0x1] %vm7_vm0, %v59_v25  }
  0x8e   :  { %108 = vst.msk [vmem:[%s222_s1 + $0xa] sm:$0x1] %vm7_vm0, %v65_v26  }
  0x90   :  { %v71_v27 = vpop.permute.xlu0 %70  }
  0x91   :  { %v77_v28 = vpop.permute.xlu1 %76   ;;  %109 = vst.msk [vmem:[%s222_s1 + $0xb] sm:$0x1] %vm7_vm0, %v71_v27  }
  0x92   :  { %110 = vst.msk [vmem:[%s222_s1 + $0xc] sm:$0x1] %vm7_vm0, %v77_v28  }
  0x94   :  { %v83_v29 = vpop.permute.xlu0 %82  }
  0x95   :  { %v89_v30 = vpop.permute.xlu1 %88   ;;  %111 = vst.msk [vmem:[%s222_s1 + $0xd] sm:$0x1] %vm7_vm0, %v83_v29  }
  0x96   :  { %112 = vst.msk [vmem:[%s222_s1 + $0xe] sm:$0x1] %vm7_vm0, %v89_v30  }
  0x98   :  { %v95_v31 = vpop.permute.xlu0 %94  }
  0x99   :  { %113 = vst.msk [vmem:[%s222_s1 + $0xf] sm:$0x1] %vm7_vm0, %v95_v31  }

// kernel: structure_encoder_forward.6
= control target key start
LH: loop header
LB: loop body
LE: loop exit
PB: predicated region body
PF: predicated region fallthrough
CT: control target
= control target key end

     0   :  { %vm92_vm0 = vcmask 261120   ;;  %s2195_s5 = inlined_call_operand.vmem [shape: bf16[32,64], index: 5, kind: input, shape index: {}]   ;;  %s2196_s2 = inlined_call_operand.vmem [shape: bf16[8,16,32], index: 2, kind: input, shape index: {}]   ;;  %s2197_s4 = inlined_call_operand.vmem [shape: bf16[32,64], index: 4, kind: input, shape index: {}]   ;;  %s2198_s3 = inlined_call_operand.vmem [shape: f32[32,32], index: 3, kind: input, shape index: {}]   ;;  %s2199_s0 = inlined_call_operand.vmem [shape: f32[16,32], index: 0, kind: input, shape index: {}]   ;;  %s2200_s1 = inlined_call_operand.vmem [shape: bf16[8,16,32], index: 1, kind: input, shape index: {}]   ;;  %s2201_s7 = inlined_call_operand.vmem [shape: f32[32,32], index: 7, kind: input, shape index: {}]   ;;  %s2202_s6 = inlined_call_operand.vmem [shape: f32[32,32], index: 6, kind: input, shape index: {}]   ;;  %s2203_s10 = inlined_call_operand.vmem [shape: f32[32,128], index: 10, kind: input, shape index: {}]   ;;  %s2204_s12 = inlined_call_operand.vmem [shape: f32[128,32], index: 12, kind: input, shape index: {}]   ;;  %s2205_s8 = inlined_call_operand.vmem [shape: f32[1,32], index: 8, kind: input, shape index: {}]   ;;  %s2206_s9 = inlined_call_operand.vmem [shape: f32[1,32], index: 9, kind: input, shape index: {}]   ;;  %s2207_s11 = inlined_call_operand.vmem [shape: f32[1,128], index: 11, kind: input, shape index: {}]   ;;  %s2208_s13 = inlined_call_operand.vmem [shape: f32[1,32], index: 13, kind: input, shape index: {}]   ;;  %s2209_s14 = inlined_call_operand.vmem [shape: f32[1,32], index: 14, kind: input, shape index: {}]   ;;  %s2210_s15 = inlined_call_operand.vmem [shape: f32[1,32], index: 15, kind: input, shape index: {}]   ;;  %s2211_s16 = inlined_call_operand.vmem [shape: f32[16,32], index: 16, kind: output, shape index: {}]  }
   0x1   :  { %2213 = sst [smem:[#allocation2_spill]] %s2195_s5  ;;  %v1669_v2 = vld [vmem:[%s2196_s2 + $0x10] sm:$0xff]   ;;  %v1671_v3 = vld [vmem:[%s2197_s4] sm:$0xff]   ;;  %v89_v5 = vld [vmem:[%s2198_s3 + $0x8] sm:$0xff] }
   0x2   :  { %s2214_s23 = sld [smem:[#allocation2_spill]]  ;;  %1461 = vmatprep.mubr.msk.bf16.mxu1 %vm92_vm0, %v1669_v2  ;;  %v88_v4 = vld [vmem:[%s2198_s3] sm:$0xff]  ;;  %v1670_v6 = vld [vmem:[%s2196_s2 + $0x18] sm:$0xff]   ;;  %v90_v9 = vld [vmem:[%s2198_s3 + $0x10] sm:$0xff] }
   0x3   :  { %v1582_v7 = vpack.c.bf16 %v89_v5, %v88_v4  ;;  %v1672_v8 = vld [vmem:[%s2196_s2 + $0x20] sm:$0xff]   ;;  %v91_v10 = vld [vmem:[%s2198_s3 + $0x18] sm:$0xff]  ;;  %v1674_v12 = vld [vmem:[%s2197_s4 + $0x8] sm:$0xff]  }
   0x4   :  { %v1586_v11 = vpack.c.bf16 %v91_v10, %v90_v9  ;;  %v1846_v13 = vld [vmem:[%s2199_s0] sm:$0xff]  ;;  %v1855_v14 = vld [vmem:[%s2199_s0 + $0x8] sm:$0xff]  ;;  %v1675_v17 = vld [vmem:[%s2196_s2 + $0x30] sm:$0xff]  }
   0x5   :  { %1583 = vmatprep.subr.bf16.mxu0 %v1582_v7  ;;  %1450 = vmatprep.mubr.msk.f32.mxu0 %vm92_vm0, %v1846_v13  ;;  %v1677_v15 = vld [vmem:[%s2196_s2] sm:$0xff]   ;;  %v1673_v16 = vld [vmem:[%s2196_s2 + $0x28] sm:$0xff]   ;;  %v1676_v19 = vld [vmem:[%s2196_s2 + $0x38] sm:$0xff]  }
   0x6   :  { %1585 = vmatpush3.bf16.msra.mxu0 %v1582_v7  ;;  %v1678_v18 = vld [vmem:[%s2196_s2 + $0x8] sm:$0xff]   ;;  %v1679_v20 = vld [vmem:[%s2200_s1] sm:$0xff]   ;;  %v1681_v22 = vld [vmem:[%s2200_s1 + $0x10] sm:$0xff]  }
   0x7   :  { %1587 = vmatprep.subr.bf16.mxu0 %v1586_v11  ;;  %v1680_v21 = vld [vmem:[%s2200_s1 + $0x8] sm:$0xff]   ;;  %v1682_v23 = vld [vmem:[%s2200_s1 + $0x18] sm:$0xff]   ;;  %v1683_v24 = vld [vmem:[%s2200_s1 + $0x20] sm:$0xff]  }
   0x8   :  { %v1667_v0 = vld [vmem:[%s2214_s23] sm:$0xff]   ;;  %v1668_v1 = vld [vmem:[%s2214_s23 + $0x8] sm:$0xff]   ;;  %v1685_v26 = vld [vmem:[%s2200_s1 + $0x30] sm:$0xff]  }
   0x9   :  { %1646 = vmatprep.subr.bf16.mxu1 %v1667_v0  ;;  %v1684_v25 = vld [vmem:[%s2200_s1 + $0x28] sm:$0xff]   ;;  %v1686_v27 = vld [vmem:[%s2200_s1 + $0x38] sm:$0xff]   ;;  %v544_v28 = vld [vmem:[%s2201_s7] sm:$0xff]  ;;  %s1723_s1 = smov 96  }
   0xa   :  { %1648 = vmatpush3.bf16.msra.mxu1 %v1667_v0  ;;  %1589 = vmatpush3.bf16.msra.mxu0 %v1586_v11  ;;  %v545_v29 = vld [vmem:[%s2201_s7 + $0x8] sm:$0xff]  ;;  %v546_v31 = vld [vmem:[%s2201_s7 + $0x10] sm:$0xff]  ;;  %v547_v32 = vld [vmem:[%s2201_s7 + $0x18] sm:$0xff] }
   0xb   :  { %1647 = vmatprep.subr.bf16.mxu1 %v1668_v1  ;;  %1453 = vmatprep.subr.bf16.mxu0 %v1667_v0  ;;  %v1590_v30 = vpack.c.bf16 %v545_v29, %v544_v28  ;;  %v1594_v33 = vpack.c.bf16 %v547_v32, %v546_v31 }
   0xd   :  { %1451 = vmatmul.mubr.msk.f32.vlgmr.msra.gmra.mrb[0].mxu0 %vm92_vm0, %v1855_v14 }
   0xe   :  { %1649 = vmatpush3.bf16.msra.mxu1 %v1668_v1  ;;  %1454 = vmatpush3.bf16.msra.mxu0 %v1667_v0 }
   0xf   :  { %1473 = vmatprep.subr.bf16.mxu1 %v1671_v3  ;;  %1457 = vmatprep.mubr.msk.bf16.mxu0 %vm92_vm0, %v1677_v15  ;;  %v980_v15 = vld [vmem:[%s2202_s6 + $0x8] sm:$0xff] }
  0x10   :  { %1455 = vmatprep.subr.bf16.mxu0 %v1668_v1 }
  0x11   :  { %1462 = vmatmul.mubr.msk.bf16.vlgmr.msra.gmra.mrb[0].mxu1 %vm92_vm0, %v1670_v6 }
  0x12   :  { %1474 = vmatpush3.bf16.msra.mxu1 %v1671_v3  ;;  %1465 = vmatprep.mubr.msk.bf16.mxu1 %vm92_vm0, %v1672_v8 }
  0x13   :  { %1475 = vmatprep.subr.bf16.mxu1 %v1674_v12  ;;  %1456 = vmatpush3.bf16.msra.mxu0 %v1668_v1 }
  0x14   :  { %1591 = vmatprep.subr.bf16.mxu0 %v1590_v30 }
  0x16   :  { %1476 = vmatpush3.bf16.msra.mxu1 %v1674_v12  ;;  %1458 = vmatmul.mubr.msk.bf16.vlgmr.msra.gmra.mrb[4].mxu0 %vm92_vm0, %v1678_v18  ;;  %v979_v12 = vld [vmem:[%s2202_s6] sm:$0xff]  ;;  %v982_v18 = vld [vmem:[%s2202_s6 + $0x18] sm:$0xff] }
  0x17   :  { %1593 = vmatpush3.bf16.msra.mxu0 %v1590_v30 }
  0x18   :  { %1595 = vmatprep.subr.bf16.mxu0 %v1594_v33 }
  0x19   :  { %1466 = vmatmul.mubr.msk.bf16.gmra.mrb[4].mxu1 %vm92_vm0, %v1673_v16  ;;  %v981_v16 = vld [vmem:[%s2202_s6 + $0x10] sm:$0xff] }
  0x1a   :  { %1469 = vmatprep.mubr.msk.bf16.mxu1 %vm92_vm0, %v1675_v17  ;;  %v1598_v17 = vpack.c.bf16 %v980_v15, %v979_v12 }
  0x1b   :  { %1597 = vmatpush3.bf16.msra.mxu0 %v1594_v33 }
  0x1c   :  { %1599 = vmatprep.subr.bf16.mxu0 %v1598_v17 }
  0x21   :  { %1470 = vmatmul.mubr.msk.bf16.gmra.mrb[8].mxu1 %vm92_vm0, %v1676_v19  ;;  %v1602_v19 = vpack.c.bf16 %v982_v18, %v981_v16 }
  0x22   :  { %1477 = vmatprep.mubr.msk.bf16.mxu1 %vm92_vm0, %v1679_v20 }
  0x29   :  { %1478 = vmatmul.mubr.msk.bf16.vlgmr.msra.gmra.mrb[12].mxu1 %vm92_vm0, %v1680_v21 }
  0x2a   :  { %1481 = vmatprep.mubr.msk.bf16.mxu1 %vm92_vm0, %v1681_v22 }
  0x31   :  { %1482 = vmatmul.mubr.msk.bf16.gmra.mrb[0].mxu1 %vm92_vm0, %v1682_v23 }
  0x32   :  { %1485 = vmatprep.mubr.msk.bf16.mxu1 %vm92_vm0, %v1683_v24 }
  0x39   :  { %1486 = vmatmul.mubr.msk.bf16.gmra.mrb[4].mxu1 %vm92_vm0, %v1684_v25 }
  0x3a   :  { %1489 = vmatprep.mubr.msk.bf16.mxu1 %vm92_vm0, %v1685_v26 }
  0x41   :  { %1490 = vmatmul.mubr.msk.bf16.gmra.mrb[8].mxu1 %vm92_vm0, %v1686_v27 }
  0xe0   :  { %v1923_v34 = vpop.f32.mrb[0].mxu0 }
  0xe1   :  { %v165_v35 = vpop.f32.mrb[1].mxu0 }
  0xe9   :  { %v1459_v36 = vpop.f32.mrb[4].mxu0 }
  0xea   :  { %v292_v37 = vpop.f32.mrb[5].mxu0 }
  0xeb   :  { %v1460_v38 = vpop.f32.mrb[6].mxu0 }
  0xec   :  { %v295_v39 = vpop.f32.mrb[7].mxu0 }
  0xfc   :  { %v1479_v40 = vpop.f32.mrb[12].mxu1 }
  0xfd   :  { %v474_v41 = vadd.f32 %v1479_v40, %v1459_v36  ;;  %v465_v42 = vpop.f32.mrb[13].mxu1 }
  0xfe   :  { %v466_v43 = vadd.f32 %v465_v42, %v292_v37  ;;  %v1480_v44 = vpop.f32.mrb[14].mxu1 }
  0xff   :  { %v530_v45 = vmul.f32 %v474_v41, %v165_v35  ;;  %v477_v46 = vadd.f32 %v1480_v44, %v1460_v38  ;;  %v468_v47 = vpop.f32.mrb[15].mxu1  ;;  %885 = vrot.lane.b32.xlu0 %v474_v41, %s1723_s1 }
 0x100   :  { %v528_v48 = vmul.f32 %v466_v43, %v165_v35  ;;  %v469_v49 = vadd.f32 %v468_v47, %v295_v39 }
 0x101   :  { %v531_v50 = vmul.f32 %v1923_v34, %v477_v46  ;;  %887 = vrot.lane.b32.xlu1 %v477_v46, %s1723_s1 }
 0x102   :  { %v529_v51 = vmul.f32 %v1923_v34, %v469_v49  ;;  %1501 = vmatprep.mubr.msk.f32.mxu0 %vm92_vm0, %v528_v48 }
 0x103   :  { %881 = vrot.lane.b32.xlu0 %v466_v43, %s1723_s1 }
 0x104   :  { %v1483_v52 = vpop.f32.mrb[0].mxu1  ;;  %1502 = vmatmul.mubr.msk.f32.vlgmr.msra.gmra.mrb[2].mxu0 %vm92_vm0, %v529_v51 }
 0x105   :  { %v534_v53 = vmul.f32 %v1483_v52, %v165_v35  ;;  %v481_v54 = vpop.f32.mrb[1].mxu1  ;;  %883 = vrot.lane.b32.xlu1 %v469_v49, %s1723_s1  ;;  %1504 = vmatprep.mubr.msk.f32.mxu0 %vm92_vm0, %v530_v45 }
 0x106   :  { %v532_v55 = vmul.f32 %v481_v54, %v165_v35  ;;  %v1484_v56 = vpop.f32.mrb[2].mxu1  ;;  %1601 = vmatpush3.bf16.msra.mxu0 %v1598_v17 }
 0x107   :  { %v535_v57 = vmul.f32 %v1484_v56, %v1923_v34  ;;  %v484_v58 = vpop.f32.mrb[3].mxu1  ;;  %893 = vrot.lane.b32.xlu0 %v1483_v52, %s1723_s1  ;;  %1603 = vmatprep.subr.bf16.mxu0 %v1602_v19 }
 0x108   :  { %v533_v59 = vmul.f32 %v1923_v34, %v484_v58  ;;  %1505 = vmatmul.mubr.msk.f32.gmra.mrb[8].mxu0 %vm92_vm0, %v531_v50 }
 0x109   :  { %895 = vrot.lane.b32.xlu1 %v1484_v56, %s1723_s1  ;;  %1507 = vmatprep.mubr.msk.f32.mxu0 %vm92_vm0, %v532_v55 }
 0x10a   :  { %1605 = vmatpush3.bf16.msra.mxu0 %v1602_v19 }
 0x10b   :  { %889 = vrot.lane.b32.xlu0 %v481_v54, %s1723_s1 }
 0x10c   :  { %v1487_v60 = vpop.f32.mrb[4].mxu1  ;;  %1508 = vmatmul.mubr.msk.f32.gmra.mrb[10].mxu0 %vm92_vm0, %v533_v59 }
 0x10d   :  { %v538_v61 = vmul.f32 %v1487_v60, %v165_v35  ;;  %v497_v62 = vpop.f32.mrb[5].mxu1  ;;  %891 = vrot.lane.b32.xlu1 %v484_v58, %s1723_s1  ;;  %1510 = vmatprep.mubr.msk.f32.mxu0 %vm92_vm0, %v534_v53 }
 0x10e   :  { %v536_v63 = vmul.f32 %v497_v62, %v165_v35  ;;  %v1488_v0 = vpop.f32.mrb[6].mxu1 }
 0x10f   :  { %v539_v1 = vmul.f32 %v1488_v0, %v1923_v34  ;;  %v500_v2 = vpop.f32.mrb[7].mxu1  ;;  %901 = vrot.lane.b32.xlu0 %v1487_v60, %s1723_s1 }
 0x110   :  { %v537_v3 = vmul.f32 %v1923_v34, %v500_v2  ;;  %1511 = vmatmul.mubr.msk.f32.gmra.mrb[12].mxu0 %vm92_vm0, %v535_v57 }
 0x111   :  { %903 = vrot.lane.b32.xlu1 %v1488_v0, %s1723_s1  ;;  %1513 = vmatprep.mubr.msk.f32.mxu0 %vm92_vm0, %v536_v63 }
 0x113   :  { %897 = vrot.lane.b32.xlu0 %v497_v62, %s1723_s1 }
 0x114   :  { %v1491_v4 = vpop.f32.mrb[8].mxu1  ;;  %1514 = vmatmul.mubr.msk.f32.gmra.mrb[14].mxu0 %vm92_vm0, %v537_v3 }
 0x115   :  { %v542_v5 = vmul.f32 %v1491_v4, %v165_v35  ;;  %v513_v6 = vpop.f32.mrb[9].mxu1  ;;  %899 = vrot.lane.b32.xlu1 %v500_v2, %s1723_s1  ;;  %1516 = vmatprep.mubr.msk.f32.mxu0 %vm92_vm0, %v538_v61 }
 0x116   :  { %v540_v7 = vmul.f32 %v513_v6, %v165_v35  ;;  %v1492_v8 = vpop.f32.mrb[10].mxu1 }
 0x117   :  { %v543_v9 = vmul.f32 %v1492_v8, %v1923_v34  ;;  %v516_v10 = vpop.f32.mrb[11].mxu1  ;;  %905 = vrot.lane.b32.xlu0 %v513_v6, %s1723_s1 }
 0x118   :  { %v541_v11 = vmul.f32 %v1923_v34, %v516_v10  ;;  %1517 = vmatmul.mubr.msk.f32.gmra.mrb[16].mxu0 %vm92_vm0, %v539_v1 }
 0x119   :  { %907 = vrot.lane.b32.xlu1 %v516_v10, %s1723_s1  ;;  %1519 = vmatprep.mubr.msk.f32.mxu0 %vm92_vm0, %v540_v7 }
 0x11b   :  { %909 = vrot.lane.b32.xlu0 %v1491_v4, %s1723_s1 }
 0x11c   :  { %1520 = vmatmul.mubr.msk.f32.gmra.mrb[18].mxu0 %vm92_vm0, %v541_v11 }
 0x11d   :  { %911 = vrot.lane.b32.xlu1 %v1492_v8, %s1723_s1  ;;  %1522 = vmatprep.mubr.msk.f32.mxu0 %vm92_vm0, %v542_v5 }
 0x120   :  { %1523 = vmatmul.mubr.msk.f32.gmra.mrb[20].mxu0 %vm92_vm0, %v543_v9 }
 0x171   :  { %v2025_v15 = vpop.permute.xlu0 %885 }
 0x173   :  { %v2006_v51 = vpop.permute.xlu1 %887 }
 0x177   :  { %v2016_v62 = vpop.permute.xlu1 %883 }
 0x17b   :  { %v2027_v16 = vpop.permute.xlu1 %895 }
 0x1d7   :  { %v1503_v20 = vpop.f32.mrb[2].mxu0 }
 0x1d8   :  { %v662_v21 = vpop.f32.mrb[3].mxu0  ;;  %v1977_v24 = vmul.f32 0.35355338, %v1503_v20 }
 0x1d9   :  { %v1979_v25 = vmul.f32 0.35355338, %v662_v21 }
 0x1da   :  { %v772_v30 = vsel %vm92_vm0, %v1977_v24, -inf }
 0x1db   :  { %v1506_v22 = vpop.f32.mrb[8].mxu0  ;;  %v757_v33 = vsel %vm92_vm0, %v1979_v25, -inf }
 0x1dc   :  { %v672_v23 = vpop.f32.mrb[9].mxu0  ;;  %v1987_v31 = vmul.f32 0.35355338, %v1506_v22 }
 0x1dd   :  { %v1993_v34 = vmul.f32 0.35355338, %v672_v23 }
 0x1de   :  { %v773_v42 = vsel %vm92_vm0, %v1987_v31, -inf }
 0x1df   :  { %v1509_v26 = vpop.f32.mrb[10].mxu0  ;;  %v758_v44 = vsel %vm92_vm0, %v1993_v34, -inf }
 0x1e0   :  { %v1981_v27 = vmul.f32 0.35355338, %v1509_v26  ;;  %v682_v28 = vpop.f32.mrb[11].mxu0  ;;  %v2036_v26 = vpop.permute.xlu0 %881 }
 0x1e1   :  { %v1983_v29 = vmul.f32 0.35355338, %v682_v28  ;;  %v892_v28 = vpop.permute.xlu1 %891 }
 0x1e2   :  { %v774_v32 = vsel %vm92_vm0, %v1981_v27, -inf }
 0x1e3   :  { %v775_v35 = vmax.f32 %v772_v30, %v774_v32  ;;  %v759_v36 = vsel %vm92_vm0, %v1983_v29, -inf  ;;  %v1512_v37 = vpop.f32.mrb[12].mxu0 }
 0x1e4   :  { %v760_v38 = vmax.f32 %v757_v33, %v759_v36  ;;  %v748_v39 = vmul.f32 0.35355338, %v1512_v37  ;;  %v692_v40 = vpop.f32.mrb[13].mxu0 }
 0x1e5   :  { %v1997_v41 = vmul.f32 0.35355338, %v692_v40 }
 0x1e6   :  { %v776_v43 = vsel %vm92_vm0, %v748_v39, -inf }
 0x1e7   :  { %v777_v45 = vmax.f32 %v773_v42, %v776_v43  ;;  %v761_v46 = vsel %vm92_vm0, %v1997_v41, -inf  ;;  %v1515_v47 = vpop.f32.mrb[14].mxu0 }
 0x1e8   :  { %v762_v48 = vmax.f32 %v758_v44, %v761_v46  ;;  %v750_v49 = vmul.f32 0.35355338, %v1515_v47  ;;  %v702_v50 = vpop.f32.mrb[15].mxu0 }
 0x1e9   :  { %v2008_v52 = vmul.f32 0.35355338, %v702_v50  ;;  %v904_v50 = vpop.permute.xlu1 %903 }
 0x1ea   :  { %v778_v53 = vsel %vm92_vm0, %v750_v49, -inf }
 0x1eb   :  { %v779_v54 = vmax.f32 %v775_v35, %v778_v53  ;;  %v763_v55 = vsel %vm92_vm0, %v2008_v52, -inf  ;;  %v1518_v56 = vpop.f32.mrb[16].mxu0 }
 0x1ec   :  { %v764_v57 = vmax.f32 %v760_v38, %v763_v55  ;;  %v752_v58 = vmul.f32 0.35355338, %v1518_v56  ;;  %v712_v59 = vpop.f32.mrb[17].mxu0 }
 0x1ed   :  { %v2013_v60 = vmul.f32 0.35355338, %v712_v59 }
 0x1ee   :  { %v780_v61 = vsel %vm92_vm0, %v752_v58, -inf }
 0x1ef   :  { %v781_v63 = vmax.f32 %v777_v45, %v780_v61  ;;  %v765_v0 = vsel %vm92_vm0, %v2013_v60, -inf  ;;  %v1521_v1 = vpop.f32.mrb[18].mxu0 }
 0x1f0   :  { %v766_v2 = vmax.f32 %v762_v48, %v765_v0  ;;  %v754_v3 = vmul.f32 0.35355338, %v1521_v1  ;;  %v722_v4 = vpop.f32.mrb[19].mxu0 }
 0x1f1   :  { %v2020_v5 = vmul.f32 0.35355338, %v722_v4 }
 0x1f2   :  { %v782_v6 = vsel %vm92_vm0, %v754_v3, -inf }
 0x1f3   :  { %v783_v7 = vmax.f32 %v779_v54, %v782_v6  ;;  %v767_v8 = vsel %vm92_vm0, %v2020_v5, -inf  ;;  %v1524_v9 = vpop.f32.mrb[20].mxu0 }
 0x1f4   :  { %v768_v10 = vmax.f32 %v764_v57, %v767_v8  ;;  %v756_v11 = vmul.f32 0.35355338, %v1524_v9  ;;  %v732_v12 = vpop.f32.mrb[21].mxu0 }
 0x1f5   :  { %v2029_v17 = vmul.f32 0.35355338, %v732_v12 }
 0x1f6   :  { %v784_v18 = vsel %vm92_vm0, %v756_v11, -inf }
 0x1f7   :  { %v785_v19 = vmax.f32 %v781_v63, %v784_v18  ;;  %v769_v20 = vsel %vm92_vm0, %v2029_v17, -inf }
 0x1f8   :  { %v770_v21 = vmax.f32 %v766_v2, %v769_v20 }
 0x1f9   :  { %v786_v22 = vmax.f32 %v783_v7, %v785_v19 }
 0x1fa   :  { %v2034_v23 = vmax.f32 %v768_v10, %v770_v21 }
 0x1fb   :  { %v788_v30 = vsub.f32 %v1977_v24, %v786_v22  ;;  %v790_v32 = vsub.f32 %v1987_v31, %v786_v22  ;;  %v792_v33 = vsub.f32 %v1981_v27, %v786_v22  ;;  %v794_v35 = vsub.f32 %v748_v39, %v786_v22 }
 0x1fc   :  { %v796_v36 = vsub.f32 %v750_v49, %v786_v22  ;;  %v798_v37 = vsub.f32 %v752_v58, %v786_v22  ;;  %v800_v38 = vsub.f32 %v754_v3, %v786_v22  ;;  %v802_v40 = vsub.f32 %v756_v11, %v786_v22  ;;  %v2053_v49 = vpop.permute.xlu0 %893  ;;  %v900_v58 = vpop.permute.xlu1 %899 }
 0x1fd   :  { %v805_v42 = vmul.f32 1.442695, %v788_v30  ;;  %v809_v43 = vmul.f32 1.442695, %v790_v32  ;;  %v813_v44 = vmul.f32 1.442695, %v792_v33  ;;  %v787_v45 = vsub.f32 %v1979_v25, %v2034_v23 }
 0x1fe   :  { %v817_v46 = vmul.f32 1.442695, %v794_v35  ;;  %v789_v47 = vsub.f32 %v1993_v34, %v2034_v23  ;;  %v821_v24 = vmul.f32 1.442695, %v796_v36  ;;  %v825_v31 = vmul.f32 1.442695, %v798_v37 }
 0x1ff   :  { %1687 = vpow2.f32 %v805_v42  ;;  %v791_v27 = vsub.f32 %v1983_v29, %v2034_v23  ;;  %v793_v39 = vsub.f32 %v1997_v41, %v2034_v23  ;;  %v795_v48 = vsub.f32 %v2008_v52, %v2034_v23 }
 0x200   :  { %1689 = vpow2.f32 %v809_v43  ;;  %v797_v25 = vsub.f32 %v2013_v60, %v2034_v23  ;;  %v829_v34 = vmul.f32 1.442695, %v800_v38  ;;  %v799_v53 = vsub.f32 %v2020_v5, %v2034_v23  ;;  %v2059_v57 = vpop.permute.xlu0 %889  ;;  %v908_v11 = vpop.permute.xlu1 %907 }
 0x201   :  { %1691 = vpow2.f32 %v813_v44  ;;  %v801_v29 = vsub.f32 %v2029_v17, %v2034_v23  ;;  %v833_v54 = vmul.f32 1.442695, %v802_v40  ;;  %v803_v41 = vmul.f32 1.442695, %v787_v45 }
 0x202   :  { %1693 = vpow2.f32 %v817_v46  ;;  %v807_v52 = vmul.f32 1.442695, %v789_v47  ;;  %v811_v55 = vmul.f32 1.442695, %v791_v27  ;;  %v815_v56 = vmul.f32 1.442695, %v793_v39 }
 0x203   :  { %1695 = vpow2.f32 %v821_v24  ;;  %v819_v59 = vmul.f32 1.442695, %v795_v48  ;;  %v823_v1 = vmul.f32 1.442695, %v797_v25  ;;  %v831_v30 = vmul.f32 1.442695, %v801_v29 }
 0x204   :  { %1697 = vpow2.f32 %v825_v31  ;;  %v2066_v10 = vpop.permute.xlu0 %901  ;;  %v912_v27 = vpop.permute.xlu1 %911 }
 0x205   :  { %1699 = vpow2.f32 %v829_v34 }
 0x206   :  { %1701 = vpow2.f32 %v833_v54 }
 0x207   :  { %1703 = vpow2.f32 %v803_v41 }
 0x208   :  { %1705 = vpow2.f32 %v807_v52  ;;  %v898_v31 = vpop.permute.xlu0 %897 }
 0x209   :  { %v1688_v60 = vpop.eup %1687  ;;  %1707 = vpow2.f32 %v811_v55 }
 0x20a   :  { %v1690_v61 = vpop.eup %1689  ;;  %v850_v63 = vsel %vm92_vm0, %v1688_v60, 0.0  ;;  %v930_v0 = vmul.f32 %v1688_v60, %v2016_v62  ;;  %1709 = vpow2.f32 %v815_v56 }
 0x20b   :  { %v1692_v2 = vpop.eup %1691  ;;  %v851_v3 = vsel %vm92_vm0, %v1690_v61, 0.0  ;;  %v932_v4 = vmul.f32 %v1690_v61, %v2006_v51  ;;  %1711 = vpow2.f32 %v819_v59  ;;  %v827_v51 = vmul.f32 1.442695, %v799_v53 }
 0x20c   :  { %v1694_v5 = vpop.eup %1693  ;;  %v852_v6 = vadd.f32 %v851_v3, %v850_v63  ;;  %v934_v7 = vmul.f32 %v1692_v2, %v892_v28  ;;  %v960_v8 = vsel %vm92_vm0, %v930_v0, 0.0  ;;  %v853_v12 = vsel %vm92_vm0, %v1692_v2, 0.0 }
 0x20d   :  { %v1696_v9 = vpop.eup %1695  ;;  %v936_v62 = vmul.f32 %v1694_v5, %v2027_v16  ;;  %v961_v17 = vsel %vm92_vm0, %v932_v4, 0.0  ;;  %1713 = vpow2.f32 %v823_v1  ;;  %v855_v22 = vsel %vm92_vm0, %v1694_v5, 0.0 }
 0x20e   :  { %v1698_v18 = vpop.eup %1697  ;;  %v854_v19 = vadd.f32 %v853_v12, %v852_v6  ;;  %v962_v20 = vadd.f32 %v961_v17, %v960_v8  ;;  %v938_v23 = vmul.f32 %v1696_v9, %v900_v58  ;;  %v963_v28 = vsel %vm92_vm0, %v934_v7, 0.0  ;;  %v906_v7 = vpop.permute.xlu0 %905 }
 0x20f   :  { %v1700_v21 = vpop.eup %1699  ;;  %v857_v35 = vsel %vm92_vm0, %v1696_v9, 0.0  ;;  %v859_v16 = vsel %vm92_vm0, %v1698_v18, 0.0  ;;  %v940_v40 = vmul.f32 %v1698_v18, %v904_v50  ;;  %v965_v43 = vsel %vm92_vm0, %v936_v62, 0.0 }
 0x210   :  { %v1702_v32 = vpop.eup %1701  ;;  %v856_v33 = vadd.f32 %v855_v22, %v854_v19  ;;  %v964_v36 = vadd.f32 %v963_v28, %v962_v20  ;;  %v861_v38 = vsel %vm92_vm0, %v1700_v21, 0.0  ;;  %v942_v42 = vmul.f32 %v1700_v21, %v908_v11 }
 0x211   :  { %v1704_v37 = vpop.eup %1703  ;;  %v863_v46 = vsel %vm92_vm0, %v1702_v32, 0.0  ;;  %1715 = vpow2.f32 %v827_v51  ;;  %v967_v39 = vsel %vm92_vm0, %v938_v23, 0.0  ;;  %v944_v53 = vmul.f32 %v1702_v32, %v912_v27  ;;  %v1084_v27 = vld [vmem:[%s2203_s10] sm:$0xff] }
 0x212   :  { %v1706_v44 = vpop.eup %1705  ;;  %v858_v45 = vadd.f32 %v857_v35, %v856_v33  ;;  %v966_v47 = vadd.f32 %v965_v43, %v964_v36  ;;  %1717 = vpow2.f32 %v831_v30  ;;  %v835_v48 = vsel %vm92_vm0, %v1704_v37, 0.0  ;;  %v910_v35 = vpop.permute.xlu0 %909 }
 0x213   :  { %v1708_v24 = vpop.eup %1707  ;;  %v836_v25 = vsel %vm92_vm0, %v1706_v44, 0.0  ;;  %v969_v41 = vsel %vm92_vm0, %v940_v40, 0.0  ;;  %v929_v55 = vmul.f32 %v1704_v37, %v2036_v26  ;;  %v931_v56 = vmul.f32 %v1706_v44, %v2025_v15 }
 0x214   :  { %v1710_v50 = vpop.eup %1709  ;;  %v860_v34 = vadd.f32 %v859_v16, %v858_v45  ;;  %v968_v29 = vadd.f32 %v967_v39, %v966_v47  ;;  %v837_v54 = vadd.f32 %v836_v25, %v835_v48  ;;  %v838_v52 = vsel %vm92_vm0, %v1708_v24, 0.0  ;;  %v1085_v39 = vld [vmem:[%s2203_s10 + $0x8] sm:$0xff]  ;;  %v1086_v48 = vld [vmem:[%s2203_s10 + $0x10] sm:$0xff] }
 0x215   :  { %v1712_v58 = vpop.eup %1711  ;;  %v933_v63 = vmul.f32 %v1708_v24, %v2059_v57  ;;  %v971_v0 = vsel %vm92_vm0, %v942_v42, 0.0  ;;  %v840_v1 = vsel %vm92_vm0, %v1710_v50, 0.0  ;;  %v945_v2 = vsel %vm92_vm0, %v929_v55, 0.0 }
 0x216   :  { %v862_v59 = vadd.f32 %v861_v38, %v860_v34  ;;  %v970_v60 = vadd.f32 %v969_v41, %v968_v29  ;;  %v839_v61 = vadd.f32 %v838_v52, %v837_v54  ;;  %v946_v3 = vsel %vm92_vm0, %v931_v56, 0.0  ;;  %v1179_v29 = vld [vmem:[%s2204_s12 + $0x8] sm:$0xff]  ;;  %v1180_v54 = vld [vmem:[%s2204_s12 + $0x10] sm:$0xff]  ;;  %v1181_v52 = vld [vmem:[%s2204_s12 + $0x18] sm:$0xff] }
 0x217   :  { %v1714_v4 = vpop.eup %1713  ;;  %v935_v15 = vmul.f32 %v1710_v50, %v2053_v49  ;;  %v973_v8 = vsel %vm92_vm0, %v944_v53, 0.0  ;;  %v842_v9 = vsel %vm92_vm0, %v1712_v58, 0.0  ;;  %v937_v57 = vmul.f32 %v1712_v58, %v898_v31  ;;  %v1087_v50 = vld [vmem:[%s2203_s10 + $0x18] sm:$0xff]  ;;  %v1178_v53 = vld [vmem:[%s2204_s12] sm:$0xff]  ;;  %v1183_v58 = vld [vmem:[%s2204_s12 + $0x28] sm:$0xff] }
 0x218   :  { %v864_v5 = vadd.f32 %v863_v46, %v862_v59  ;;  %v972_v6 = vadd.f32 %v971_v0, %v970_v60  ;;  %v841_v26 = vadd.f32 %v840_v1, %v839_v61  ;;  %v947_v11 = vadd.f32 %v946_v3, %v945_v2  ;;  %v1182_v56 = vld [vmem:[%s2204_s12 + $0x20] sm:$0xff]  ;;  %v1184_v60 = vld [vmem:[%s2204_s12 + $0x30] sm:$0xff]  ;;  %v1185_v61 = vld [vmem:[%s2204_s12 + $0x38] sm:$0xff] }
 0x219   :  { %v948_v17 = vsel %vm92_vm0, %v933_v63, 0.0  ;;  %v844_v18 = vsel %vm92_vm0, %v1714_v4, 0.0  ;;  %v939_v21 = vmul.f32 %v1714_v4, %v2066_v10  ;;  %v950_v49 = vsel %vm92_vm0, %v935_v15, 0.0  ;;  %v1186_v0 = vld [vmem:[%s2204_s12 + $0x40] sm:$0xff]  ;;  %v1187_v1 = vld [vmem:[%s2204_s12 + $0x48] sm:$0xff]  ;;  %v1188_v3 = vld [vmem:[%s2204_s12 + $0x50] sm:$0xff] }
 0x21a   :  { %v974_v12 = vadd.f32 %v973_v8, %v972_v6  ;;  %1719 = vrcp.f32 %v864_v5  ;;  %v843_v62 = vadd.f32 %v842_v9, %v841_v26  ;;  %v949_v19 = vadd.f32 %v948_v17, %v947_v11  ;;  %v1189_v4 = vld [vmem:[%s2204_s12 + $0x58] sm:$0xff]  ;;  %v1190_v6 = vld [vmem:[%s2204_s12 + $0x60] sm:$0xff]  ;;  %v1191_v26 = vld [vmem:[%s2204_s12 + $0x68] sm:$0xff] }
 0x21b   :  { %v1716_v20 = vpop.eup %1715  ;;  %v952_v33 = vsel %vm92_vm0, %v937_v57, 0.0  ;;  %v954_v40 = vsel %vm92_vm0, %v939_v21, 0.0  ;;  %v1606_v25 = vpack.c.bf16 %v1085_v39, %v1084_v27  ;;  %v1610_v34 = vpack.c.bf16 %v1087_v50, %v1086_v48  ;;  %v1358_v8 = vld [vmem:[%s2205_s8] ss:$0 sm:$0xff] }
 0x21c   :  { %v845_v51 = vadd.f32 %v844_v18, %v843_v62  ;;  %v1718_v22 = vpop.eup %1717  ;;  %v846_v23 = vsel %vm92_vm0, %v1716_v20, 0.0  ;;  %v951_v28 = vadd.f32 %v950_v49, %v949_v19  ;;  %v941_v32 = vmul.f32 %v1716_v20, %v906_v7  ;;  %v1359_v62 = vld [vmem:[%s2206_s9] ss:$0 sm:$0xff]  ;;  %v1192_v20 = vld [vmem:[%s2204_s12 + $0x70] sm:$0xff] }
 0x21d   :  { %v848_v16 = vsel %vm92_vm0, %v1718_v22, 0.0  ;;  %v943_v38 = vmul.f32 %v1718_v22, %v910_v35  ;;  %1607 = vmatprep.subr.bf16.mxu0 %v1606_v25  ;;  %v1614_v41 = vpack.c.bf16 %v1179_v29, %v1178_v53  ;;  %v1618_v55 = vpack.c.bf16 %v1181_v52, %v1180_v54 }
 0x21e   :  { %v847_v30 = vadd.f32 %v846_v23, %v845_v51  ;;  %v953_v36 = vadd.f32 %v952_v33, %v951_v28  ;;  %v956_v10 = vsel %vm92_vm0, %v941_v32, 0.0  ;;  %v1622_v59 = vpack.c.bf16 %v1183_v58, %v1182_v56  ;;  %v1360_v51 = vld [vmem:[%s2207_s11] ss:$0 sm:$0xff] }
 0x21f   :  { %v958_v45 = vsel %vm92_vm0, %v943_v38, 0.0  ;;  %1615 = vmatprep.subr.bf16.mxu1 %v1614_v41  ;;  %v1626_v63 = vpack.c.bf16 %v1185_v61, %v1184_v60  ;;  %v1630_v2 = vpack.c.bf16 %v1187_v1, %v1186_v0  ;;  %v1634_v5 = vpack.c.bf16 %v1189_v4, %v1188_v3  ;;  %v1363_v32 = vld [vmem:[%s2208_s13] ss:$0 sm:$0xff] }
 0x220   :  { %v849_v37 = vadd.f32 %v848_v16, %v847_v30  ;;  %v955_v42 = vadd.f32 %v954_v40, %v953_v36  ;;  %1617 = vmatpush3.bf16.msra.mxu1 %v1614_v41  ;;  %v1638_v15 = vpack.c.bf16 %v1191_v26, %v1190_v6  ;;  %v1364_v36 = vld [vmem:[%s2209_s14] ss:$0 sm:$0xff] }
 0x221   :  { %1619 = vmatprep.subr.bf16.mxu1 %v1618_v55  ;;  %v1365_v40 = vld [vmem:[%s2210_s15] ss:$0 sm:$0xff] }
 0x222   :  { %1721 = vrcp.f32 %v849_v37  ;;  %v957_v43 = vadd.f32 %v956_v10, %v955_v42 }
 0x224   :  { %v1720_v44 = vpop.eup %1719  ;;  %v959_v46 = vadd.f32 %v958_v45, %v957_v43  ;;  %1621 = vmatpush3.bf16.msra.mxu1 %v1618_v55 }
 0x225   :  { %v978_v47 = vmul.f32 %v1720_v44, %v974_v12  ;;  %1623 = vmatprep.subr.bf16.mxu1 %v1622_v59 }
 0x228   :  { %1625 = vmatpush3.bf16.msra.mxu1 %v1622_v59 }
 0x229   :  { %1627 = vmatprep.subr.bf16.mxu1 %v1626_v63 }
 0x22c   :  { %v1722_v24 = vpop.eup %1721  ;;  %1629 = vmatpush3.bf16.msra.mxu1 %v1626_v63 }
 0x22d   :  { %v977_v31 = vmul.f32 %v1722_v24, %v959_v46  ;;  %1631 = vmatprep.subr.bf16.mxu1 %v1630_v2 }
 0x22f   :  { %1533 = vmatprep.mubr.msk.f32.mxu0 %vm92_vm0, %v977_v31 }
 0x230   :  { %1534 = vmatmul.mubr.msk.f32.vlgmr.msra.gmra.mrb[22].mxu0 %vm92_vm0, %v978_v47  ;;  %1633 = vmatpush3.bf16.msra.mxu1 %v1630_v2 }
 0x231   :  { %1609 = vmatpush3.bf16.msra.mxu0 %v1606_v25  ;;  %1635 = vmatprep.subr.bf16.mxu1 %v1634_v5 }
 0x232   :  { %1611 = vmatprep.subr.bf16.mxu0 %v1610_v34 }
 0x234   :  { %1637 = vmatpush3.bf16.msra.mxu1 %v1634_v5 }
 0x235   :  { %1613 = vmatpush3.bf16.msra.mxu0 %v1610_v34  ;;  %1639 = vmatprep.subr.bf16.mxu1 %v1638_v15 }
 0x238   :  { %1641 = vmatpush3.bf16.msra.mxu1 %v1638_v15 }
 0x303   :  { %v1535_v7 = vpop.f32.mrb[22].mxu0 }
 0x304   :  { %v1065_v9 = vadd.f32 %v1535_v7, %v1855_v14  ;;  %v1055_v57 = vpop.f32.mrb[23].mxu0 }
 0x305   :  { %v1064_v11 = vadd.f32 %v1055_v57, %v1846_v13  ;;  %v1193_v13 = vld [vmem:[%s2204_s12 + $0x78] sm:$0xff] }
 0x306   :  { %v1074_v12 = vmul.f32 %v1358_v8, %v1065_v9  ;;  %v1642_v14 = vpack.c.bf16 %v1193_v13, %v1192_v20 }
 0x307   :  { %v1073_v17 = vmul.f32 %v1358_v8, %v1064_v11 }
 0x308   :  { %v1083_v19 = vadd.f32 %v1359_v62, %v1074_v12  ;;  %1643 = vmatprep.subr.bf16.mxu1 %v1642_v14 }
 0x309   :  { %v1082_v18 = vadd.f32 %v1359_v62, %v1073_v17  ;;  %1645 = vmatpush3.bf16.msra.mxu1 %v1642_v14 }
 0x30b   :  { %1544 = vmatprep.mubr.msk.f32.mxu0 %vm92_vm0, %v1082_v18 }
 0x30c   :  { %1545 = vmatmul.mubr.msk.f32.vlgmr.msra.gmra.mrb[24].mxu0 %vm92_vm0, %v1083_v19 }
 0x3df   :  { %v1546_v21 = vpop.f32.mrb[24].mxu0 }
 0x3e0   :  { %v1173_v49 = vadd.f32 %v1546_v21, %v1360_v51  ;;  %v1167_v22 = vpop.f32.mrb[25].mxu0 }
 0x3e1   :  { %v1168_v23 = vadd.f32 %v1360_v51, %v1167_v22 }
 0x3e2   :  { %v1177_v30 = vmax.f32 %v1173_v49, 0.0 }
 0x3e3   :  { %v1176_v28 = vmax.f32 %v1168_v23, 0.0 }
 0x3e5   :  { %1579 = vmatprep.mubr.f32.mxu1 %v1176_v28 }
 0x3e6   :  { %1580 = vmatmul.mubr.f32.vlgmr.msra.gmra.mrb[16].mxu1 %v1177_v30 }
 0x4b9   :  { %v1581_v33 = vpop.f32.mrb[16].mxu1 }
 0x4ba   :  { %v1273_v35 = vadd.f32 %v1581_v33, %v1363_v32  ;;  %v1267_v16 = vpop.f32.mrb[17].mxu1 }
 0x4bb   :  { %v1268_v37 = vadd.f32 %v1363_v32, %v1267_v16 }
 0x4bc   :  { %v1277_v38 = vadd.f32 %v1273_v35, %v1083_v19 }
 0x4bd   :  { %v1276_v42 = vadd.f32 %v1268_v37, %v1082_v18 }
 0x4be   :  { %v1286_v10 = vmul.f32 %v1364_v36, %v1277_v38 }
 0x4bf   :  { %v1285_v43 = vmul.f32 %v1364_v36, %v1276_v42 }
 0x4c0   :  { %v1295_v44 = vadd.f32 %v1365_v40, %v1286_v10 }
 0x4c1   :  { %v1294_v45 = vadd.f32 %v1365_v40, %v1285_v43 }
 0x4c2   :  { %1297 = vst.msk [vmem:[%s2211_s16 + $0x8] sm:$0xff] %vm92_vm0, %v1295_v44 }
 0x4c3   :  { %1296 = vst.msk [vmem:[%s2211_s16] sm:$0xff] %vm92_vm0, %v1294_v45 }

</bundles_post_ra>
